<compile_context>
chip_gen: v6e
topology: v6e:2x2x1
jax: 0.10.0
libtpu: 0.0.40
codegen_flags: <defaults>
</compile_context>

<pallas_src>
import math

import jax
import jax.numpy as jnp
from jax.experimental import pallas as pl
from jax.experimental.pallas import tpu as pltpu


_SQRT_HALF = 0.7071067811865476


def _gelu_exact(x):
    # nn.GELU() default: 0.5 * x * (1 + erf(x / sqrt(2)))
    return 0.5 * x * (1.0 + jax.lax.erf(x * _SQRT_HALF))


# -----------------------------------------------------------------------------
# Kernel: one lane-dense tile of the JianBlock MLP (lane-packed layout).
#   x_ref : [tm, P*N]        activations, P batch rows packed per 128-lane row
#   w1_ref: [P*N, P*d_ff]    block-diag(fc1.weight^T)  (pre-cast)
#   b1_ref: [1,  P*d_ff]     fc1.bias tiled P times (f32)
#   w2_ref: [P*d_ff, P*N]    block-diag(fc2.weight^T)  (pre-cast)
#   b2_ref: [1,  P*N]        fc2.bias tiled P times (f32)
#   o_ref : [tm, P*N]
# -----------------------------------------------------------------------------
def _jian_kernel(x_ref, w1_ref, b1_ref, w2_ref, b2_ref, o_ref):
    w1 = w1_ref[...]
    w2 = w2_ref[...]
    x = x_ref[...].astype(w1.dtype)           # single cast to matmul dtype

    # fc1 (block-diagonal): [tm, P*N] @ [P*N, P*d_ff] -> f32 [tm, P*d_ff]
    h = jax.lax.dot_general(
        x, w1, dimension_numbers=(((1,), (0,)), ((), ())),
        preferred_element_type=jnp.float32,
    ) + b1_ref[...]

    # exact-erf GELU, f32 elementwise (v5e-safe).
    h = _gelu_exact(h)

    # dropout(p=0) / eval mode -> identity.
    # TODO(synk): training-mode dropout (pltpu.prng_*) not implemented.

    # fc2 (block-diagonal): [tm, P*d_ff] @ [P*d_ff, P*N] -> f32 [tm, P*N]
    y = jax.lax.dot_general(
        h.astype(w2.dtype), w2, dimension_numbers=(((1,), (0,)), ((), ())),
        preferred_element_type=jnp.float32,
    ) + b2_ref[...]

    o_ref[...] = y.astype(o_ref.dtype)


# -----------------------------------------------------------------------------
# Wrapper: x [..., patch_num] -> same shape.
# -----------------------------------------------------------------------------
def factorized_jian_mixing(x, params, *, use_bf16=True, target_block_bytes=1 << 20):
    w1, b1, w2, b2 = params["w1"], params["b1"], params["w2"], params["b2"]
    d_ff, N = w1.shape
    assert x.shape[-1] == N, "last dim of x must be patch_num"
    assert w2.shape == (N, d_ff) and b1.shape == (d_ff,) and b2.shape == (N,)

    orig_shape = x.shape
    M = math.prod(orig_shape[:-1])
    mm_dtype = jnp.bfloat16 if use_bf16 else jnp.float32

    # ---- lane packing: P consecutive batch rows -> one 128-lane-dense row ----
    if N <= 128 and 128 % N == 0:
        P = 128 // N
    else:
        P = 1   # blocks still use the full (last-dim) extent; just not 128-dense
    W_in, W_hid = P * N, P * d_ff

    # Pre-transposed (and pre-cast) block-diagonal weights. Built once, tiny.
    w1_t = jnp.asarray(w1).T.astype(mm_dtype)            # [N, d_ff]
    w2_t = jnp.asarray(w2).T.astype(mm_dtype)            # [d_ff, N]
    if P > 1:
        eye = jnp.eye(P, dtype=mm_dtype)
        w1_blk = jnp.kron(eye, w1_t)                      # [P*N, P*d_ff]
        w2_blk = jnp.kron(eye, w2_t)                      # [P*d_ff, P*N]
    else:
        w1_blk, w2_blk = w1_t, w2_t
    b1_blk = jnp.tile(jnp.asarray(b1, jnp.float32), P).reshape(1, W_hid)
    b2_blk = jnp.tile(jnp.asarray(b2, jnp.float32), P).reshape(1, W_in)

    # ---- flatten, pad rows to a multiple of P, pack the lane axis (free view) ----
    x_flat = x.reshape(M, N)
    M_p = -(-M // P)
    if M_p * P != M:
        x_flat = jnp.pad(x_flat, ((0, M_p * P - M), (0, 0)))
    x_packed = x_flat.reshape(M_p, W_in)

    # ---- sublane tile: ~target_block_bytes blocks, 8-aligned, >=2 grid steps ----
    itemsize = jnp.dtype(x.dtype).itemsize
    row_bytes = W_in * itemsize
    target_p = max(8, (target_block_bytes // row_bytes) // 8 * 8)
    if M_p >= 2 * target_p:
        tm_p = target_p                                   # big streaming tiles
    elif M_p >= 16:
        tm_p = ((-(-M_p // 2)) + 7) // 8 * 8              # two 8-aligned blocks
    else:
        tm_p = M_p                                        # tiny: one full block
    n_blocks = -(-M_p // tm_p)
    M_pad = n_blocks * tm_p
    if M_pad != M_p:
        x_packed = jnp.pad(x_packed, ((0, M_pad - M_p), (0, 0)))

    # ---- VMEM budget (derived; capped below v7x's 64 MiB physical VMEM) ----
    mm_itemsize = jnp.dtype(mm_dtype).itemsize
    blk_io = tm_p * W_in * itemsize                       # one activation block
    wt_bytes = (w1_blk.size + w2_blk.size) * mm_itemsize \
        + (b1_blk.size + b2_blk.size) * 4
    interm = tm_p * (W_in + W_hid) * (4 + mm_itemsize)    # f32 + cast temps
    vmem_est = 4 * blk_io + 2 * wt_bytes + interm         # dbl-buffered in+out
    vmem_limit = int(min(48 << 20, max(2 * vmem_est, 16 << 20)))

    out = pl.pallas_call(
        _jian_kernel,
        out_shape=jax.ShapeDtypeStruct((M_pad, W_in), x.dtype),
        grid=(n_blocks,),
        in_specs=[
            pl.BlockSpec((tm_p, W_in), lambda i: (i, 0)),     # activations
            pl.BlockSpec(w1_blk.shape, lambda i: (0, 0)),     # fc1 weight (blkdiag)
            pl.BlockSpec(b1_blk.shape, lambda i: (0, 0)),     # fc1 bias
            pl.BlockSpec(w2_blk.shape, lambda i: (0, 0)),     # fc2 weight (blkdiag)
            pl.BlockSpec(b2_blk.shape, lambda i: (0, 0)),     # fc2 bias
        ],
        out_specs=pl.BlockSpec((tm_p, W_in), lambda i: (i, 0)),
        compiler_params=pltpu.CompilerParams(
            dimension_semantics=("parallel",),
            vmem_limit_bytes=vmem_limit,
        ),
    )(x_packed, w1_blk, b1_blk, w2_blk, b2_blk)

    # Unpack lanes (free contiguous reshape) and drop any padding rows.
    y = out.reshape(M_pad * P, N)
    if M_pad * P != M:
        y = y[:M]
    return y.reshape(orig_shape)


# -----------------------------------------------------------------------------
# Pure-JAX f32 reference (correctness check only).
# -----------------------------------------------------------------------------
def _jian_ref(x, params):
    f32 = jnp.float32
    h = jnp.dot(x.astype(f32), params["w1"].T.astype(f32),
                precision=jax.lax.Precision.HIGHEST) + params["b1"]
    h = _gelu_exact(h)
    return jnp.dot(h, params["w2"].T.astype(f32),
                   precision=jax.lax.Precision.HIGHEST) + params["b2"]


# -----------------------------------------------------------------------------
# Deterministic init matching nn.Linear defaults:
# U(-1/sqrt(fan_in), 1/sqrt(fan_in)) for weight and bias, native torch layout.
# -----------------------------------------------------------------------------
def init_params(key, patch_num, d_ff):
    k1, k2, k3, k4 = jax.random.split(key, 4)
    b_in = float(patch_num) ** -0.5
    b_ff = float(d_ff) ** -0.5
    return {
        "w1": jax.random.uniform(k1, (d_ff, patch_num), jnp.float32, -b_in, b_in),
        "b1": jax.random.uniform(k2, (d_ff,), jnp.float32, -b_in, b_in),
        "w2": jax.random.uniform(k3, (patch_num, d_ff), jnp.float32, -b_ff, b_ff),
        "b2": jax.random.uniform(k4, (patch_num,), jnp.float32, -b_ff, b_ff),
    }


if __name__ == "__main__":
    key = jax.random.PRNGKey(0)

    # x: [bs, n_vars, patch_len, patch_num]; MLP over patch_num.
    # M = 2*4*16 = 128 rows -> 16 lane-packed rows -> two 8-row grid steps.
    bs, n_vars, patch_len, patch_num = 2, 4, 16, 16
    d_ff = 32

    key, xk, pk = jax.random.split(key, 3)
    x = jax.random.normal(xk, (bs, n_vars, patch_len, patch_num), jnp.float32)
    params = init_params(pk, patch_num, d_ff)

    ref = _jian_ref(x, params)

    # f32 MXU path.
    out_f32 = jax.block_until_ready(
        factorized_jian_mixing(x, params, use_bf16=False))
    assert out_f32.shape == x.shape
    err_f32 = float(jnp.max(jnp.abs(out_f32 - ref)))
    assert err_f32 < 3e-2, f"f32 mismatch vs reference: max abs err {err_f32}"

    # bf16 MXU path (default; f32 accumulation, f32 elementwise).
    out = jax.block_until_ready(factorized_jian_mixing(x, params, use_bf16=True))
    assert out.shape == x.shape
    err = float(jnp.max(jnp.abs(out - ref)))
    assert err < 3e-2, f"bf16 mismatch vs reference: max abs err {err}"

    print("KERNEL_OK")
</pallas_src>

<mosaic_0001>
module attributes {stable_mosaic.version = 11 : i64} {
  func.func @_jian_kernel(%arg0: i32, %arg1: memref<8x128xf32, #tpu.memory_space<vmem>>, %arg2: memref<128x256xf32, #tpu.memory_space<vmem>>, %arg3: memref<1x256xf32, #tpu.memory_space<vmem>>, %arg4: memref<256x128xf32, #tpu.memory_space<vmem>>, %arg5: memref<1x128xf32, #tpu.memory_space<vmem>>, %arg6: memref<8x128xf32, #tpu.memory_space<vmem>>) attributes {dimension_semantics = [#tpu.dimension_semantics<parallel>], iteration_bounds = array<i64: 2>, scalar_prefetch = 0 : i64, scratch_operands = 0 : i64, tpu.core_type = #tpu.core_type<tc>, window_params = [{transform_indices = @transform_0, window_bounds = array<i64: 8, 128>}, {pipeline_mode = #tpu.pipeline_mode<synchronous>, transform_indices = @transform_1, window_bounds = array<i64: 128, 256>}, {pipeline_mode = #tpu.pipeline_mode<synchronous>, transform_indices = @transform_2, window_bounds = array<i64: 1, 256>}, {pipeline_mode = #tpu.pipeline_mode<synchronous>, transform_indices = @transform_3, window_bounds = array<i64: 256, 128>}, {pipeline_mode = #tpu.pipeline_mode<synchronous>, transform_indices = @transform_4, window_bounds = array<i64: 1, 128>}, {transform_indices = @transform_5, window_bounds = array<i64: 8, 128>}]} {
    %c0 = arith.constant 0 : index
    %c0_0 = arith.constant 0 : index
    %0 = vector.load %arg2[%c0, %c0_0] : memref<128x256xf32, #tpu.memory_space<vmem>>, vector<128x256xf32>
    %c0_1 = arith.constant 0 : index
    %c0_2 = arith.constant 0 : index
    %1 = vector.load %arg4[%c0_1, %c0_2] : memref<256x128xf32, #tpu.memory_space<vmem>>, vector<256x128xf32>
    %c0_3 = arith.constant 0 : index
    %c0_4 = arith.constant 0 : index
    %2 = vector.load %arg1[%c0_3, %c0_4] : memref<8x128xf32, #tpu.memory_space<vmem>>, vector<8x128xf32>
    %cst = arith.constant dense<0.000000e+00> : vector<8x256xf32>
    %3 = tpu.matmul %2, %0, %cst {dimension_numbers = #tpu.dot_dimension_numbers<[1], [0], [0], [1], [0, 0, 1, 1], [], []>} : vector<8x128xf32>, vector<128x256xf32>, vector<8x256xf32> -> vector<8x256xf32>
    %c0_5 = arith.constant 0 : index
    %c0_6 = arith.constant 0 : index
    %4 = vector.load %arg3[%c0_5, %c0_6] : memref<1x256xf32, #tpu.memory_space<vmem>>, vector<1x256xf32>
    %5 = vector.broadcast %4 : vector<1x256xf32> to vector<8x256xf32>
    %6 = arith.addf %3, %5 : vector<8x256xf32>
    %cst_7 = arith.constant 5.000000e-01 : f32
    %7 = vector.broadcast %cst_7 : f32 to vector<8x256xf32>
    %8 = arith.mulf %7, %6 : vector<8x256xf32>
    %cst_8 = arith.constant 0.707106769 : f32
    %9 = vector.broadcast %cst_8 : f32 to vector<8x256xf32>
    %10 = arith.mulf %6, %9 : vector<8x256xf32>
    %11 = math.erf %10 : vector<8x256xf32>
    %cst_9 = arith.constant 1.000000e+00 : f32
    %12 = vector.broadcast %cst_9 : f32 to vector<8x256xf32>
    %13 = arith.addf %12, %11 : vector<8x256xf32>
    %14 = arith.mulf %8, %13 : vector<8x256xf32>
    %cst_10 = arith.constant dense<0.000000e+00> : vector<8x128xf32>
    %15 = tpu.matmul %14, %1, %cst_10 {dimension_numbers = #tpu.dot_dimension_numbers<[1], [0], [0], [1], [0, 0, 1, 1], [], []>} : vector<8x256xf32>, vector<256x128xf32>, vector<8x128xf32> -> vector<8x128xf32>
    %c0_11 = arith.constant 0 : index
    %c0_12 = arith.constant 0 : index
    %16 = vector.load %arg5[%c0_11, %c0_12] : memref<1x128xf32, #tpu.memory_space<vmem>>, vector<1x128xf32>
    %17 = vector.broadcast %16 : vector<1x128xf32> to vector<8x128xf32>
    %18 = arith.addf %15, %17 : vector<8x128xf32>
    %c0_13 = arith.constant 0 : index
    %c0_14 = arith.constant 0 : index
    %19 = vector.load %arg6[%c0_13, %c0_14] : memref<8x128xf32, #tpu.memory_space<vmem>>, vector<8x128xf32>
    tpu.vector_store %arg6[%c0_13, %c0_14], %18 {strides = array<i32>} : memref<8x128xf32, #tpu.memory_space<vmem>>, vector<8x128xf32>,
    return
  }
  func.func @transform_0(%arg0: i32) -> (i32, i32) {
    %c0_i32 = arith.constant 0 : i32
    %c0_i32_0 = arith.constant 0 : i32
    return %arg0, %c0_i32 : i32, i32
  }
  func.func @transform_1(%arg0: i32) -> (i32, i32) {
    %c0_i32 = arith.constant 0 : i32
    %c0_i32_0 = arith.constant 0 : i32
    %c0_i32_1 = arith.constant 0 : i32
    return %c0_i32, %c0_i32_0 : i32, i32
  }
  func.func @transform_2(%arg0: i32) -> (i32, i32) {
    %c0_i32 = arith.constant 0 : i32
    %c0_i32_0 = arith.constant 0 : i32
    %c0_i32_1 = arith.constant 0 : i32
    return %c0_i32, %c0_i32_0 : i32, i32
  }
  func.func @transform_3(%arg0: i32) -> (i32, i32) {
    %c0_i32 = arith.constant 0 : i32
    %c0_i32_0 = arith.constant 0 : i32
    %c0_i32_1 = arith.constant 0 : i32
    return %c0_i32, %c0_i32_0 : i32, i32
  }
  func.func @transform_4(%arg0: i32) -> (i32, i32) {
    %c0_i32 = arith.constant 0 : i32
    %c0_i32_0 = arith.constant 0 : i32
    %c0_i32_1 = arith.constant 0 : i32
    return %c0_i32, %c0_i32_0 : i32, i32
  }
  func.func @transform_5(%arg0: i32) -> (i32, i32) {
    %c0_i32 = arith.constant 0 : i32
    %c0_i32_0 = arith.constant 0 : i32
    return %arg0, %c0_i32 : i32, i32
  }
}

</mosaic_0001>

<bundles_post_ra>
// kernel: tpu_custom_call.1
= control target key start
LH: loop header
LB: loop body
LE: loop exit
PB: predicated region body
PF: predicated region fallthrough
CT: control target
= control target key end

     0   :  { %10 = vsyncpa [#allocation3], 0  ;;  %s1103_s0 = inlined_call_operand.hbm [shape: f32[16,128], index: 0, kind: input, shape index: {}]   ;;  %s1104_s1 = inlined_call_operand.hbm [shape: f32[128,256], index: 1, kind: input, shape index: {}]   ;;  %s1105_s2 = inlined_call_operand.vmem [shape: f32[1,256], index: 2, kind: input, shape index: {}]   ;;  %s1106_s3 = inlined_call_operand.hbm [shape: f32[256,128], index: 3, kind: input, shape index: {}]   ;;  %s1107_s4 = inlined_call_operand.vmem [shape: f32[1,128], index: 4, kind: input, shape index: {}]   ;;  %s1108_s5 = inlined_call_operand.hbm [shape: f32[16,128], index: 5, kind: output, shape index: {}]  }
   0x1   :  { %12 = vsyncpa [#allocation3 + $0x1], 0 }
   0x2   :  { %13 = vsyncpa [#allocation6], 0 }
   0x3   :  { %14 = vsyncpa [#allocation4], 0 }
   0x4   :  { %16 = vsyncpa [#allocation4 + $0x1], 0  ;;  %s925_s18 = smov 0   ;;  %s927_s19 = smov 0  }
   0x5   :  { %s929_s20 = smov 0   ;;  %s931_s21 = smov 0  }
   0x6 LB: > { %s946_s22 = sadd.s32 4294967295, %s884_s21   ;;  %s608_s23 = sadd.s32 4294967294, %s884_s21   ;;  %s884_s21 = sphi %s931_s21, %s1130_s21   ;;  %s880_s20 = sphi %s929_s20, %s1129_s20   ;;  %s876_s19 = sphi %s927_s19, %s1128_s19   ;;  %s872_s18 = sphi %s925_s18, %s1127_s18  }
   0x7   : > { %p42_p0 = scmp.ne.s32.totalorder %s876_s19, %s872_s18  ;;  %p1109_p1 = scmp.eq.s32.totalorder %s946_s22, 0 }
   0x8   : > { %p156_p3 = scmp.eq.s32.totalorder %s608_s23, 1  ;;  %p609_p5 = scmp.ge.s32.totalorder %s884_s21, 1 }
   0x9   : > { %p955_p4 = por %p1109_p1, %p42_p0  ;;  %p163_p7 = scmp.lt.s32.totalorder %s884_s21, 3 }
   0xa   : > { %p960_p6 = por %p156_p3, %p42_p0  ;;  %s886_s27 = smov [#allocation5]  }
   0xb   : > { %s1113_s24 = scalar_select %p955_p4, 1, 0 }
   0xc   : > { %s1114_s25 = scalar_select %p960_p6, 1, 0 }
   0xd   : > { %p965_p8 = pnand %p609_p5, %p163_p7  ;;  %s175_s28 = sshll.u32 %s886_s27, 4  ;;  %s176_s28 = int_to_ptr.vmem [resolvable:$true] %s175_s28 }
   0xe   : > { %s887_s30 = smov [#allocation7]   ;;  %s747_s7 = scalar_lea.vmem %s176_s28, 4096 }
   0xf   : > { %s1115_s26 = scalar_select %p965_p8, 1, 0 }
  0x10   : > { %p672_p9 = pneg %p965_p8  ;;  %s191_s6 = sshll.u32 %s887_s30, 4  ;;  %s192_s6 = int_to_ptr.vmem [resolvable:$true] %s191_s6 }
  0x11   : > { %p748_p13 = scmp.ne.s32.totalorder %s176_s28, %s747_s7  ;;  %p755_p5 = scmp.lt.s32.totalorder %s176_s28, %s176_s28 }
  0x12   : > { %p974_p11 = pnand %p672_p9, %p1109_p1  ;;  %p756_p7 = scmp.lt.s32.totalorder %s747_s7, %s747_s7 }
  0x14   : > { %p738_p12 = pneg %p974_p11  ;;  %p757_p10 = por %p756_p7, %p755_p5 }
  0x16   : > { %p750_p0 = pnand %p748_p13, %p738_p12 }
  0x18   : > { %p751_p3 = pneg %p750_p0 }
  0x1a   : > { %p758_p9 = pnand %p757_p10, %p751_p3 }
  0x1c   : > { %761 = shalt.err (!%p758_p9)
}
  0x1d   : > { %s888_s8 = smov 256   ;;  %s889_s9 = smov 16  }
  0x1e   : > { %675 = dma.hbm_to_vmem [thread:$0]  (!%p974_p11), %s1104_s1, 4096, %s176_s28, [#allocation6], %s888_s8, %s888_s8, %s889_s9  }
  0x1f   : > { %s773_s12 = scalar_lea.vmem %s192_s6, 4096  ;;  %p781_p2 = scmp.lt.s32.totalorder %s192_s6, %s192_s6 }
  0x20   : > { %p774_p1 = scmp.ne.s32.totalorder %s192_s6, %s773_s12  ;;  %p782_p6 = scmp.lt.s32.totalorder %s773_s12, %s773_s12 }
  0x22   : > { %p776_p13 = pnand %p774_p1, %p738_p12  ;;  %p783_p5 = por %p782_p6, %p781_p2 }
  0x24   : > { %p777_p0 = pneg %p776_p13 }
  0x26   : > { %p784_p10 = pnand %p783_p5, %p777_p0 }
  0x28   : > { %787 = shalt.err (!%p784_p10)
}
  0x29   : > { %s890_s13 = smov 128   ;;  %s891_s14 = smov 8  }
  0x2a   : > { %678 = dma.hbm_to_vmem [thread:$0]  (!%p974_p11), %s1106_s3, 4096, %s192_s6, [#allocation6], %s890_s13, %s890_s13, %s891_s14  }
  0x2b   : > { %s997_s17 = sadd.s32 1, %s884_s21   ;;  %s29_s27 = sadd.s32 1, %s880_s20 }
  0x2c   : > { %s26_s23 = ssub.s32 %s884_s21, %s997_s17  ;;  %p36_p2 = scmp.ne.s32.totalorder %s880_s20, %s876_s19 }
  0x2d   : > { %p27_p1 = scmp.eq.s32.totalorder %s26_s23, 0  ;;  %p37_p6 = scmp.eq.s32.totalorder %s884_s21, 0 }
  0x2e   : > { %p1117_p3 = scmp.eq.s32.totalorder %s946_s22, 1  ;;  %p689_p9 = scmp.lt.s32.totalorder %s884_s21, 2 }
  0x2f   : > { %s1006_s28 = scalar_select %p27_p1, %s880_s20, %s29_s27  }
  0x30   : > { %p38_p12 = por %p37_p6, %p36_p2  ;;  %p1010_p7 = por %p1117_p3, %p36_p2 }
  0x31   : > { %s208_s29 = sand.u32 1, %s880_s20   ;;  %s614_s6 = sshll.u32 %s884_s21, 7 }
  0x32   : > { %s1118_s30 = scalar_select %p1010_p7, 1, 0 }
  0x33   : > { %s613_s7 = sshll.u32 %s208_s29, 3  ;;  %s1020_s10 = scalar_lea.hbm %s1103_s0, %s614_s6 }
  0x34   : > { %s212_s11 = scalar_lea.vmem [#allocation2], %s613_s7  ;;  %p1022_p11 = pnand %p689_p9, %p38_p12 }
  0x35   : > { %s219_s12 = sshll.u32 %s212_s11, 4  ;;  %s209_s14 = scalar_lea.sflag [#allocation3], %s208_s29  ;;  %s220_s12 = int_to_ptr.vmem [resolvable:$true] %s219_s12 }
  0x36   : > { %s788_s15 = scalar_lea.hbm %s1020_s10, 128  ;;  %p790_p0 = pneg %p1022_p11 }
  0x37   : > { %p789_p13 = scmp.ne.s32.totalorder %s1020_s10, %s788_s15  ;;  %s793_s27 = scalar_lea.hbm %s1103_s0, 256 }
  0x38   : > { %p794_p1 = scmp.lt.s32.totalorder %s1020_s10, %s1103_s0  ;;  %p795_p2 = scmp.lt.s32.totalorder %s793_s27, %s788_s15 }
  0x39   : > { %p791_p5 = pnand %p790_p0, %p789_p13 }
  0x3a   : > { %p796_p6 = por %p795_p2, %p794_p1 }
  0x3b   : > { %p792_p10 = pneg %p791_p5 }
  0x3d   : > { %p797_p12 = pnand %p796_p6, %p792_p10 }
  0x3f   : > { %800 = shalt.err (!%p797_p12)
}
  0x40   : > { %s801_s8 = scalar_lea.vmem %s220_s12, 128  ;;  %s892_s29 = smov [#allocation2]  }
  0x41   : > { %p802_p3 = scmp.ne.s32.totalorder %s220_s12, %s801_s8  ;;  %s806_s9 = sshll.u32 %s892_s29, 4  ;;  %s807_s9 = int_to_ptr.vmem [resolvable:$false] %s806_s9 }
  0x42   : > { %s808_s11 = scalar_lea.vmem %s807_s9, 256  ;;  %p809_p13 = scmp.lt.s32.totalorder %s220_s12, %s807_s9 }
  0x43   : > { %p804_p9 = pnand %p802_p3, %p790_p0  ;;  %p810_p5 = scmp.lt.s32.totalorder %s808_s11, %s801_s8 }
  0x45   : > { %p805_p7 = pneg %p804_p9  ;;  %p811_p4 = por %p810_p5, %p809_p13 }
  0x47   : > { %p812_p8 = pnand %p811_p4, %p805_p7 }
  0x49   : > { %815 = shalt.err (!%p812_p8)
}
  0x4a   : > { %682 = dma.hbm_to_vmem [thread:$0]  (!%p1022_p11), %s1020_s10, 128, %s220_s12, %s209_s14  }
  0x4b   : > { %p1120_p10 = scmp.ne.s32.totalorder %s1115_s26, 0 }
  0x4c   : > { %s1043_s15 = sand.u32 (!%p1120_p10), 1, %s876_s19   ;;  %p1121_p4 = scmp.ne.s32.totalorder (!%p1120_p10), %s1113_s24, 0 }
  0x4d   : > { %228 = sbr.rel (%p1120_p10) target bundleno = 549 (0x225), region = 40  ;;  %s616_s16 = sshll.u32 (!%p1120_p10), %s1043_s15, 3 }
  0x4e   : > { %s231_s23 = scalar_lea.sflag (!%p1120_p10), [#allocation3], %s1043_s15  ;;  %s1049_s27 = scalar_lea.vmem (!%p1120_p10), [#allocation2], %s616_s16 }
  0x52   : > { %859 = dma.done.wait (%p1121_p4), %s231_s23, 128  }
  0x53   : > { %861 = vsyncadd (%p1121_p4), %s231_s23, 4294967168  ;;  %p1122_p8 = scmp.eq.s32.totalorder %s946_s22, 0 }
  0x55   : > { %863 = dma.done.wait (%p1122_p8), [#allocation6], 8192   ;;  %p1123_p7 = pmov %p1122_p8 }
  0x56   : > { %v893_v0 = vmov 0.0   ;;  %v300_v1 = vld [vmem:[#allocation5 + $0xf8] sm:$0xff]  ;;  %v299_v2 = vld [vmem:[#allocation5 + $0xf0] sm:$0xff]  ;;  %v298_v3 = vld [vmem:[#allocation5 + $0xe8] sm:$0xff]  ;;  %s622_s13 = sshll.u32 %s946_s22, 7  ;;  %s268_s14 = scalar_lea.vmem [#allocation8], %s616_s16 }
  0x57   : > { %865 = vsyncadd (%p1123_p7), [#allocation6], 4294959104  ;;  %410 = vmatprep.mubr.f32.mxu0 %v893_v0  ;;  %346 = vmatprep.subr.mxu0 %v300_v1  ;;  %v297_v4 = vld [vmem:[#allocation5 + $0xe0] sm:$0xff]  ;;  %v296_v5 = vld [vmem:[#allocation5 + $0xd8] sm:$0xff]  ;;  %s519_s6 = sshll.u32 %s268_s14, 4  ;;  %s517_s29 = scalar_lea.hbm %s1108_s5, %s622_s13  ;;  %s520_s6 = int_to_ptr.vmem [resolvable:$true] %s519_s6 }
  0x58   : > { %347 = vmatpush1.msra.mxu0 %v299_v2  ;;  %v295_v6 = vld [vmem:[#allocation5 + $0xd0] sm:$0xff]  ;;  %v294_v7 = vld [vmem:[#allocation5 + $0xc8] sm:$0xff]  ;;  %v293_v8 = vld [vmem:[#allocation5 + $0xc0] sm:$0xff]  ;;  %v336_v2 = vlaneseq  ;;  %s506_s9 = scalar_lea.sflag [#allocation4], %s1043_s15  ;;  %s816_s11 = scalar_lea.vmem %s520_s6, 128 }
  0x59   : > { %348 = vmatprep.subr.mxu0 %v298_v3  ;;  %v292_v9 = vld [vmem:[#allocation5 + $0xb8] sm:$0xff]  ;;  %v291_v10 = vld [vmem:[#allocation5 + $0xb0] sm:$0xff]  ;;  %v290_v11 = vld [vmem:[#allocation5 + $0xa8] sm:$0xff]  ;;  %p817_p11 = scmp.ne.s32.totalorder %s520_s6, %s816_s11  ;;  %p1124_p0 = scmp.ne.s32.totalorder %s1118_s30, 0 }
  0x5a   : > { %349 = vmatpush1.msra.mxu0 %v297_v4  ;;  %v289_v12 = vld [vmem:[#allocation5 + $0xa0] sm:$0xff]  ;;  %v288_v13 = vld [vmem:[#allocation5 + $0x98] sm:$0xff]  ;;  %v287_v14 = vld [vmem:[#allocation5 + $0x90] sm:$0xff]  ;;  %v337_v3 = vshrl.u32 %v336_v2, 7  ;;  %s894_s23 = smov [#allocation8]  }
  0x5b   : > { %350 = vmatprep.subr.mxu0 %v296_v5  ;;  %v332_v15 = vld [vmem:[#allocation7 + $0xf8] sm:$0xff]  ;;  %v331_v17 = vld [vmem:[#allocation7 + $0xf0] sm:$0xff]  ;;  %v286_v18 = vld [vmem:[#allocation5 + $0x88] sm:$0xff]  ;;  %p818_p1 = pnand %p817_p11, %p1124_p0 }
  0x5c   : > { %351 = vmatpush1.msra.mxu0 %v295_v6  ;;  %v316_v16 = vld [vmem:[#allocation7 + $0x78] sm:$0xff]  ;;  %625 = vmatprep.subr.mxu1 %v332_v15  ;;  %v315_v19 = vld [vmem:[#allocation7 + $0x70] sm:$0xff]  ;;  %v285_v20 = vld [vmem:[#allocation5 + $0x80] sm:$0xff]  ;;  %v338_v4 = vsub.s32 0, %v337_v3  ;;  %v342_v6 = vsub.s32 1, %v337_v3 }
  0x5d   : > { %352 = vmatprep.subr.mxu0 %v294_v7  ;;  %626 = vmatpush3.msra.mxu1 %v316_v16  ;;  %v330_v21 = vld [vmem:[#allocation7 + $0xe8] sm:$0xff]  ;;  %v284_v22 = vld [vmem:[#allocation5 + $0x78] sm:$0xff]  ;;  %v283_v24 = vld [vmem:[#allocation5 + $0x70] sm:$0xff]  ;;  %p819_p2 = pneg %p818_p1 }
  0x5e   : > { %353 = vmatpush1.msra.mxu0 %v293_v8  ;;  %627 = vmatprep.subr.mxu1 %v331_v17  ;;  %v314_v23 = vld [vmem:[#allocation7 + $0x68] sm:$0xff]  ;;  %v281_v26 = vld [vmem:[#allocation5 + $0x60] sm:$0xff]  ;;  %v280_v27 = vld [vmem:[#allocation5 + $0x58] sm:$0xff] }
  0x5f   : > { %354 = vmatprep.subr.mxu0 %v292_v9  ;;  %628 = vmatpush3.msra.mxu1 %v315_v19  ;;  %v282_v25 = vld [vmem:[#allocation5 + $0x68] sm:$0xff]  ;;  %v279_v28 = vld [vmem:[#allocation5 + $0x50] sm:$0xff]  ;;  %v277_v30 = vld [vmem:[#allocation5 + $0x40] sm:$0xff] }
  0x60   : > { %355 = vmatpush1.msra.mxu0 %v291_v10  ;;  %629 = vmatprep.subr.mxu1 %v330_v21  ;;  %v278_v29 = vld [vmem:[#allocation5 + $0x48] sm:$0xff]  ;;  %v276_v31 = vld [vmem:[#allocation5 + $0x38] sm:$0xff]  ;;  %v275_v32 = vld [vmem:[#allocation5 + $0x30] sm:$0xff] }
  0x61   : > { %356 = vmatprep.subr.mxu0 %v290_v11  ;;  %630 = vmatpush3.msra.mxu1 %v314_v23  ;;  %v274_v33 = vld [vmem:[#allocation5 + $0x28] sm:$0xff]  ;;  %v273_v34 = vld [vmem:[#allocation5 + $0x20] sm:$0xff]  ;;  %v272_v35 = vld [vmem:[#allocation5 + $0x18] sm:$0xff] }
  0x62   : > { %357 = vmatpush1.msra.mxu0 %v289_v12  ;;  %v271_v36 = vld [vmem:[#allocation5 + $0x10] sm:$0xff]  ;;  %v270_v37 = vld [vmem:[#allocation5 + $0x8] sm:$0xff]  ;;  %v269_v38 = vld [vmem:[#allocation5] sm:$0xff] }
  0x63   : > { %358 = vmatprep.subr.mxu0 %v288_v13  ;;  %v333_v39 = vld [vmem:[%s1049_s27] sm:$0xff]  ;;  %v329_v40 = vld [vmem:[#allocation7 + $0xe0] sm:$0xff]  ;;  %v326_v46 = vld [vmem:[#allocation7 + $0xc8] sm:$0xff]  ;;  %s820_s27 = sshll.u32 %s894_s23, 4  ;;  %s821_s27 = int_to_ptr.vmem [resolvable:$false] %s820_s27 }
  0x64   : > { %359 = vmatpush1.msra.mxu0 %v287_v14  ;;  %631 = vmatprep.subr.mxu1 %v329_v40  ;;  %v313_v41 = vld [vmem:[#allocation7 + $0x60] sm:$0xff]  ;;  %v328_v42 = vld [vmem:[#allocation7 + $0xd8] sm:$0xff]  ;;  %v327_v44 = vld [vmem:[#allocation7 + $0xd0] sm:$0xff]  ;;  %s822_s22 = scalar_lea.vmem %s821_s27, 256  ;;  %p823_p6 = scmp.lt.s32.totalorder %s520_s6, %s821_s27 }
  0x65   : > { %360 = vmatprep.subr.mxu0 %v286_v18  ;;  %632 = vmatpush3.msra.mxu1 %v313_v41  ;;  %v312_v43 = vld [vmem:[#allocation7 + $0x58] sm:$0xff]  ;;  %v311_v45 = vld [vmem:[#allocation7 + $0x50] sm:$0xff]  ;;  %v310_v47 = vld [vmem:[#allocation7 + $0x48] sm:$0xff]  ;;  %p824_p12 = scmp.lt.s32.totalorder %s822_s22, %s816_s11 }
  0x66   : > { %361 = vmatpush1.msra.mxu0 %v285_v20  ;;  %633 = vmatprep.subr.mxu1 %v328_v42  ;;  %v325_v48 = vld [vmem:[#allocation7 + $0xc0] sm:$0xff]  ;;  %v324_v50 = vld [vmem:[#allocation7 + $0xb8] sm:$0xff]  ;;  %v323_v52 = vld [vmem:[#allocation7 + $0xb0] sm:$0xff] }
  0x67   : > { %362 = vmatprep.subr.mxu0 %v284_v22  ;;  %634 = vmatpush3.msra.mxu1 %v312_v43  ;;  %v309_v49 = vld [vmem:[#allocation7 + $0x40] sm:$0xff]  ;;  %v308_v51 = vld [vmem:[#allocation7 + $0x38] sm:$0xff]  ;;  %v307_v53 = vld [vmem:[#allocation7 + $0x30] sm:$0xff]  ;;  %p825_p3 = por %p824_p12, %p823_p6 }
  0x68   : > { %363 = vmatpush1.msra.mxu0 %v283_v24  ;;  %635 = vmatprep.subr.mxu1 %v327_v44  ;;  %v322_v54 = vld [vmem:[#allocation7 + $0xa8] sm:$0xff]  ;;  %v321_v56 = vld [vmem:[#allocation7 + $0xa0] sm:$0xff]  ;;  %v320_v58 = vld [vmem:[#allocation7 + $0x98] sm:$0xff] }
  0x69   : > { %364 = vmatprep.subr.mxu0 %v282_v25  ;;  %636 = vmatpush3.msra.mxu1 %v311_v45  ;;  %v306_v55 = vld [vmem:[#allocation7 + $0x28] sm:$0xff]  ;;  %v305_v57 = vld [vmem:[#allocation7 + $0x20] sm:$0xff]  ;;  %v304_v59 = vld [vmem:[#allocation7 + $0x18] sm:$0xff]  ;;  %p826_p9 = pnand %p825_p3, %p819_p2 }
  0x6a   : > { %365 = vmatpush1.msra.mxu0 %v281_v26  ;;  %637 = vmatprep.subr.mxu1 %v326_v46  ;;  %v319_v60 = vld [vmem:[#allocation7 + $0x90] sm:$0xff]  ;;  %v318_v62 = vld [vmem:[#allocation7 + $0x88] sm:$0xff]  ;;  %v317_v0 = vld [vmem:[#allocation7 + $0x80] sm:$0xff] }
  0x6b   : > { %366 = vmatprep.subr.mxu0 %v280_v27  ;;  %638 = vmatpush3.msra.mxu1 %v310_v47  ;;  %v303_v61 = vld [vmem:[#allocation7 + $0x10] sm:$0xff]  ;;  %v302_v63 = vld [vmem:[#allocation7 + $0x8] sm:$0xff]  ;;  %v301_v1 = vld [vmem:[#allocation7] sm:$0xff] }
  0x6c   : > { %367 = vmatpush1.msra.mxu0 %v279_v28  ;;  %639 = vmatprep.subr.mxu1 %v325_v48  ;;  %v334_v5 = vld [vmem:[%s1105_s2] sm:$0x3] }
  0x6d   : > { %368 = vmatprep.subr.mxu0 %v278_v29  ;;  %640 = vmatpush3.msra.mxu1 %v309_v49  ;;  %v339_v7 = vrot.slane %v334_v5, %v338_v4  ;;  %v343_v8 = vrot.slane %v334_v5, %v342_v6  ;;  %v620_v24 = vld [vmem:[%s1107_s4] ss:$0 sm:$0xff] }
  0x6e   : > { %369 = vmatpush1.msra.mxu0 %v277_v30  ;;  %641 = vmatprep.subr.mxu1 %v324_v50 }
  0x6f   : > { %370 = vmatprep.subr.mxu0 %v276_v31  ;;  %642 = vmatpush3.msra.mxu1 %v308_v51 }
  0x70   : > { %371 = vmatpush1.msra.mxu0 %v275_v32  ;;  %643 = vmatprep.subr.mxu1 %v323_v52 }
  0x71   : > { %372 = vmatprep.subr.mxu0 %v274_v33  ;;  %644 = vmatpush3.msra.mxu1 %v307_v53 }
  0x72   : > { %373 = vmatpush1.msra.mxu0 %v273_v34  ;;  %645 = vmatprep.subr.mxu1 %v322_v54 }
  0x73   : > { %374 = vmatprep.subr.mxu0 %v272_v35  ;;  %646 = vmatpush3.msra.mxu1 %v306_v55 }
  0x74   : > { %375 = vmatpush1.msra.mxu0 %v271_v36  ;;  %647 = vmatprep.subr.mxu1 %v321_v56 }
  0x75   : > { %376 = vmatprep.subr.mxu0 %v270_v37  ;;  %648 = vmatpush3.msra.mxu1 %v305_v57 }
  0x76   : > { %377 = vmatpush1.msra.mxu0 %v269_v38  ;;  %649 = vmatprep.subr.mxu1 %v320_v58 }
  0x77   : > { %411 = vmatmul.mubr.f32.vlgmr.msra.gmra.mxu0 %v333_v39  ;;  %650 = vmatpush3.msra.mxu1 %v304_v59 }
  0x78   : > { %651 = vmatprep.subr.mxu1 %v319_v60 }
  0x79   : > { %652 = vmatpush3.msra.mxu1 %v303_v61 }
  0x7a   : > { %653 = vmatprep.subr.mxu1 %v318_v62 }
  0x7b   : > { %654 = vmatpush3.msra.mxu1 %v302_v63 }
  0x7c   : > { %655 = vmatprep.subr.mxu1 %v317_v0 }
  0x7d   : > { %656 = vmatpush3.msra.mxu1 %v301_v1 }
 0x137   : > { %v412_v9 = vpop.f32.mrf.mxu0 }
 0x138   : > { %v413_v10 = vadd.f32 %v412_v9, %v339_v7 }
 0x139   : > { %v414_v11 = vpop.f32.mrf.mxu0 }
 0x13a   : > { %v419_v12 = vmul.f32 0.70710677, %v413_v10  ;;  %v415_v13 = vadd.f32 %v414_v11, %v343_v8  ;;  %v417_v20 = vmul.f32 0.5, %v413_v10 }
 0x13c   : > { %732 = verf.f32 %v419_v12  ;;  %v420_v14 = vmul.f32 0.70710677, %v415_v13  ;;  %v418_v18 = vmul.f32 0.5, %v415_v13 }
 0x13e   : > { %734 = verf.f32 %v420_v14 }
 0x149   : > { %v733_v15 = vpop.eup %732 }
 0x14a   : > { %v423_v17 = vadd.f32 1.0, %v733_v15 }
 0x14b   : > { %v735_v16 = vpop.eup %734 }
 0x14c   : > { %v424_v19 = vadd.f32 1.0, %v735_v16  ;;  %v425_v22 = vmul.f32 %v423_v17, %v417_v20 }
 0x14e   : > { %v426_v21 = vmul.f32 %v424_v19, %v418_v18 }
 0x150   : > { %498 = vmatprep.mubr.f32.mxu1 %v426_v21 }
 0x151   : > { %499 = vmatmul.mubr.f32.vlgmr.msra.gmra.mxu1 %v425_v22 }
 0x211   : > { %v657_v23 = vpop.f32.mrf.mxu1 }
 0x213   : > { %v658_v25 = vpop.f32.mrf.mxu1 }
 0x214   : > { %v659_v26 = vadd.f32 %v658_v25, %v657_v23 }
 0x216   : > { %v501_v27 = vadd.f32 %v659_v26, %v620_v24 }
 0x218   : > { %504 = vst [vmem:[%s268_s14] sm:$0xff] %v501_v27 }
 0x219   : > { %829 = shalt.err (!%p826_p9)
}
 0x21a   : > { %s830_s16 = scalar_lea.hbm %s517_s29, 128  ;;  %s834_s26 = scalar_lea.hbm %s1108_s5, 256 }
 0x21b   : > { %p831_p13 = scmp.ne.s32.totalorder %s517_s29, %s830_s16  ;;  %p835_p4 = scmp.lt.s32.totalorder %s517_s29, %s1108_s5 }
 0x21c   : > { %p836_p8 = scmp.lt.s32.totalorder %s834_s26, %s830_s16 }
 0x21d   : > { %p832_p5 = pnand %p831_p13, %p1124_p0 }
 0x21e   : > { %p837_p7 = por %p836_p8, %p835_p4 }
 0x21f   : > { %p833_p10 = pneg %p832_p5 }
 0x221   : > { %p838_p11 = pnand %p837_p7, %p833_p10 }
 0x223   : > { %841 = shalt.err (!%p838_p11)
}
 0x224   : > { %670 = dma.vmem_to_hbm [thread:$0]  (%p1124_p0), %s520_s6, 128, %s517_s29, %s506_s9  }
 0x225 PF: > { %s531_s13 = sand.u32 1, %s872_s18   ;;  %p1125_p1 = scmp.ne.s32.totalorder %s1114_s25, 0 }
 0x226   : > { %p1126_p2 = scmp.ge.s32.totalorder %s884_s21, 2  ;;  %s532_s14 = scalar_lea.sflag [#allocation4], %s531_s13 }
 0x228   : > { %p684_p6 = pnand %p1126_p2, %p1125_p1 }
 0x22a   : > { %p685_p12 = pneg %p684_p6 }
 0x22c   : > { %867 = dma.done.wait (%p685_p12), %s532_s14, 128  }
 0x22d   : > { %869 = vsyncadd (%p685_p12), %s532_s14, 4294967168  ;;  %p19_p3 = scmp.ge.s32.totalorder %s997_s17, 4   ;;  %s1127_s18 = smov %s876_s19 }
 0x22e   : > { %s1128_s19 = smov %s880_s20  ;;  %s1129_s20 = smov %s1006_s28 }
 0x22f   : > { %s1130_s21 = smov %s997_s17  ;;  %21 = sbr.rel (!%p19_p3) target bundleno = 6 (0x6), region = 93 }
 0x234   :  { %537 = vsyncpa [#allocation3], 1 }
 0x235   :  { %539 = vsyncpa [#allocation3 + $0x1], 1 }
 0x236   :  { %540 = vsyncpa [#allocation6], 1 }
 0x237   :  { %541 = vsyncpa [#allocation4], 1 }
 0x238   :  { %543 = vsyncpa [#allocation4 + $0x1], 1 }

</bundles_post_ra>
